<compile_context>
chip_gen: v5e
topology: v5e:2x2
jax: 0.10.0
libtpu: 0.0.40
codegen_flags: <defaults>
</compile_context>

<pallas_src>
import jax
import jax.numpy as jnp
from jax.experimental import pallas as pl
from jax.experimental.pallas import tpu as pltpu


IN_FEATURES = 10
OUT_FEATURES = 2

_LANE = 128
_SUBLANE = 8
_DEFAULT_TILE_B = 64 * 1024      # 64K batch columns / grid step (~12.6 MiB VMEM)
_MAX_TILE_B = 128 * 1024         # keeps double-buffered footprint <= ~25 MiB (v7x-safe)


def _round_up(x, m):
    return ((x + m - 1) // m) * m


def _linear_t_kernel(xT_ref, w_ref, b_ref, yT_ref):
    """Lane-dense linear: y^T = W @ x^T + b, batch on the 128-lane axis.

    xT_ref : VMEM (IN, TILE_B)  f32  -- batch is the lane (fast) axis
    w_ref  : VMEM (IN, OUT)     f32  -- constant index_map -> resident
    b_ref  : SMEM (OUT,)        f32  -- bias scalars
    yT_ref : VMEM (OUT, TILE_B) f32
    """
    x = xT_ref[...]                                       # (IN, TB)
    rows = []
    for o in range(OUT_FEATURES):                         # OUT == 2, static unroll
        w_col = w_ref[:, o:o + 1]                         # (IN, 1), lane-broadcast
        # VPU multiply + XLU sublane reduce.  The MXU is intentionally idle:
        # a (TB,10)x(10,2) matmul uses <0.2% of it and the kernel is HBM-bound.
        row = jnp.sum(x * w_col, axis=0, keepdims=True)   # (1, TB)
        rows.append(row + b_ref[o])
    yT_ref[...] = jnp.concatenate(rows, axis=0).astype(yT_ref.dtype)


def _linear_t_pallas(xT, w_io, bias, *, tile_b):
    """y^T (OUT, B) = W^T-applied linear on xT (IN, B), batch lane-dense."""
    IN, B = xT.shape
    OUT = w_io.shape[1]
    assert w_io.shape == (IN, OUT) and bias.shape == (OUT,)

    if B <= tile_b:
        # Single full-array block; block_shape == array dims is always legal.
        tile_b = B
        grid_b = 1
    else:
        # Lane (last) block dim must be a multiple of 128 when tiling.
        tile_b = max(_LANE, (min(tile_b, _MAX_TILE_B) // _LANE) * _LANE)
        grid_b = pl.cdiv(B, tile_b)

    # Explicit VMEM budget: double-buffered, sublane-padded tiles + headroom.
    x_tile_bytes = _round_up(IN, _SUBLANE) * tile_b * 4
    y_tile_bytes = _round_up(OUT, _SUBLANE) * tile_b * 4
    vmem_bytes = 2 * (x_tile_bytes + y_tile_bytes) + (2 << 20)
    vmem_bytes = min(max(vmem_bytes, 16 << 20), 48 << 20)   # v5e default .. v7x-safe

    grid_spec = pl.GridSpec(
        grid=(grid_b,),
        in_specs=[
            pl.BlockSpec((IN, tile_b), lambda i: (0, i)),        # x^T batch tile
            pl.BlockSpec((IN, OUT), lambda i: (0, 0)),           # weight, resident
            pl.BlockSpec(memory_space=pltpu.MemorySpace.SMEM),   # bias scalars
        ],
        out_specs=pl.BlockSpec((OUT, tile_b), lambda i: (0, i)),
    )

    return pl.pallas_call(
        _linear_t_kernel,
        out_shape=jax.ShapeDtypeStruct((OUT, B), xT.dtype),
        grid_spec=grid_spec,
        compiler_params=pltpu.CompilerParams(
            dimension_semantics=("parallel",),
            vmem_limit_bytes=vmem_bytes,
        ),
    )(xT, w_io, bias)


def prepare_linear_params(weight_oi, bias):
    """One-time prep: torch-layout weight (OUT, IN) -> (IN, OUT); bias as-is."""
    return jnp.transpose(weight_oi), bias


def model_forward(x, w_io, bias, *, tile_b=_DEFAULT_TILE_B):
    """y = x @ W^T + b for x of shape (B, IN); matches nn.Linear(10, 2)."""
    # Wrapper-side layout plumbing: batch onto the lane axis (lane-dense I/O).
    xT = jnp.transpose(x)                                   # (IN, B)
    yT = _linear_t_pallas(xT, w_io, bias, tile_b=tile_b)    # (OUT, B)
    return jnp.transpose(yT)                                # (B, OUT)


if __name__ == "__main__":
    key = jax.random.PRNGKey(0)
    k_w, k_b, k_x, k_x2, k_x3 = jax.random.split(key, 5)

    IN, OUT = IN_FEATURES, OUT_FEATURES

    # Deterministic init mirroring nn.Linear's U(-1/sqrt(fan_in), 1/sqrt(fan_in)),
    # weight kept in torch (out, in) layout; transposed ONCE at prep time.
    bound = 1.0 / jnp.sqrt(jnp.float32(IN))
    weight = jax.random.uniform(k_w, (OUT, IN), jnp.float32, -bound, bound)
    bias = jax.random.uniform(k_b, (OUT,), jnp.float32, -bound, bound)
    w_io, b = prepare_linear_params(weight, bias)            # (IN, OUT), (OUT,)

    # --- small toy batch (matches the module's usage); single-block path ---
    B = 8
    x = jax.random.normal(k_x, (B, IN), jnp.float32)
    y = jax.block_until_ready(model_forward(x, w_io, b))
    y_ref = x @ weight.T + bias
    assert y.shape == (B, OUT)
    assert jnp.allclose(y, y_ref, atol=1e-5, rtol=1e-5), "mismatch (small batch)"

    # --- tiled path: grid > 1, exact multiple of the tile ---
    B2 = 1024
    x2 = jax.random.normal(k_x2, (B2, IN), jnp.float32)
    y2 = jax.block_until_ready(model_forward(x2, w_io, b, tile_b=256))  # grid = (4,)
    y2_ref = x2 @ weight.T + bias
    assert jnp.allclose(y2, y2_ref, atol=1e-5, rtol=1e-5), "mismatch (tiled batch)"

    # --- tiled path with a partial last tile (masked lane write-back) ---
    B3 = 900
    x3 = jax.random.normal(k_x3, (B3, IN), jnp.float32)
    y3 = jax.block_until_ready(model_forward(x3, w_io, b, tile_b=256))  # grid = (4,)
    y3_ref = x3 @ weight.T + bias
    assert jnp.allclose(y3, y3_ref, atol=1e-5, rtol=1e-5), "mismatch (partial tile)"

    print("KERNEL_OK")
</pallas_src>

<mosaic_0001>
module attributes {stable_mosaic.version = 11 : i64} {
  func.func @_linear_t_kernel(%arg0: i32, %arg1: memref<10x8xf32, #tpu.memory_space<vmem>>, %arg2: memref<10x2xf32, #tpu.memory_space<vmem>>, %arg3: memref<2xf32, #tpu.memory_space<smem>>, %arg4: memref<2x8xf32, #tpu.memory_space<vmem>>) attributes {dimension_semantics = [#tpu.dimension_semantics<parallel>], iteration_bounds = array<i64: 1>, scalar_prefetch = 0 : i64, scratch_operands = 0 : i64, tpu.core_type = #tpu.core_type<tc>, window_params = [{transform_indices = @transform_0, window_bounds = array<i64: 10, 8>}, {pipeline_mode = #tpu.pipeline_mode<synchronous>, transform_indices = @transform_1, window_bounds = array<i64: 10, 2>}, {transform_indices = @transform_2, window_bounds = array<i64: 2>}, {transform_indices = @transform_3, window_bounds = array<i64: 2, 8>}]} {
    %c0 = arith.constant 0 : index
    %c0_0 = arith.constant 0 : index
    %0 = vector.load %arg1[%c0, %c0_0] : memref<10x8xf32, #tpu.memory_space<vmem>>, vector<10x8xf32>
    %c0_1 = arith.constant 0 : index
    %c0_2 = arith.constant 0 : index
    %1 = vector.load %arg2[%c0_1, %c0_2] : memref<10x2xf32, #tpu.memory_space<vmem>>, vector<10x1xf32>
    %2 = vector.broadcast %1 : vector<10x1xf32> to vector<10x8xf32>
    %3 = arith.mulf %0, %2 : vector<10x8xf32>
    %cst = arith.constant dense<0.000000e+00> : vector<8xf32>
    %4 = vector.multi_reduction <add>, %3, %cst [0] : vector<10x8xf32> to vector<8xf32>
    %5 = vector.shape_cast %4 : vector<8xf32> to vector<1x8xf32>
    %c0_3 = arith.constant 0 : index
    %6 = memref.load %arg3[%c0_3] : memref<2xf32, #tpu.memory_space<smem>>
    %7 = vector.broadcast %6 : f32 to vector<1x8xf32>
    %8 = arith.addf %5, %7 : vector<1x8xf32>
    %c0_4 = arith.constant 0 : index
    %c1 = arith.constant 1 : index
    %9 = vector.load %arg2[%c0_4, %c1] : memref<10x2xf32, #tpu.memory_space<vmem>>, vector<10x1xf32>
    %10 = vector.broadcast %9 : vector<10x1xf32> to vector<10x8xf32>
    %11 = arith.mulf %0, %10 : vector<10x8xf32>
    %cst_5 = arith.constant dense<0.000000e+00> : vector<8xf32>
    %12 = vector.multi_reduction <add>, %11, %cst_5 [0] : vector<10x8xf32> to vector<8xf32>
    %13 = vector.shape_cast %12 : vector<8xf32> to vector<1x8xf32>
    %c1_6 = arith.constant 1 : index
    %14 = memref.load %arg3[%c1_6] : memref<2xf32, #tpu.memory_space<smem>>
    %15 = vector.broadcast %14 : f32 to vector<1x8xf32>
    %16 = arith.addf %13, %15 : vector<1x8xf32>
    %17 = tpu.concatenate %8, %16 in 0 : vector<1x8xf32>, vector<1x8xf32> -> vector<2x8xf32>
    %c0_7 = arith.constant 0 : index
    %c0_8 = arith.constant 0 : index
    %18 = vector.load %arg4[%c0_7, %c0_8] : memref<2x8xf32, #tpu.memory_space<vmem>>, vector<2x8xf32>
    tpu.vector_store %arg4[%c0_7, %c0_8], %17 {strides = array<i32>} : memref<2x8xf32, #tpu.memory_space<vmem>>, vector<2x8xf32>,
    return
  }
  func.func @transform_0(%arg0: i32) -> (i32, i32) {
    %c0_i32 = arith.constant 0 : i32
    %c0_i32_0 = arith.constant 0 : i32
    return %c0_i32, %arg0 : i32, i32
  }
  func.func @transform_1(%arg0: i32) -> (i32, i32) {
    %c0_i32 = arith.constant 0 : i32
    %c0_i32_0 = arith.constant 0 : i32
    %c0_i32_1 = arith.constant 0 : i32
    return %c0_i32, %c0_i32_0 : i32, i32
  }
  func.func @transform_2(%arg0: i32) -> i32 {
    %c0_i32 = arith.constant 0 : i32
    %c0_i32_0 = arith.constant 0 : i32
    return %c0_i32 : i32
  }
  func.func @transform_3(%arg0: i32) -> (i32, i32) {
    %c0_i32 = arith.constant 0 : i32
    %c0_i32_0 = arith.constant 0 : i32
    return %c0_i32, %arg0 : i32, i32
  }
}

</mosaic_0001>

<bundles_post_ra>
// kernel: tpu_custom_call.1
= control target key start
LH: loop header
LB: loop body
LE: loop exit
PB: predicated region body
PF: predicated region fallthrough
CT: control target
= control target key end

     0   :  { %8 = vsyncpa [#allocation4], 0  ;;  %s193_s0 = inlined_call_operand.vmem [shape: f32[10,8], index: 0, kind: input, shape index: {}]   ;;  %s194_s1 = inlined_call_operand.vmem [shape: f32[10,2], index: 1, kind: input, shape index: {}]   ;;  %s195_s2 = inlined_call_operand.vmem [shape: f32[2], index: 2, kind: input, shape index: {}]   ;;  %s196_s3 = inlined_call_operand.hbm [shape: f32[2,8], index: 3, kind: output, shape index: {}]  }
   0x1   :  { %9 = vsyncpa [#allocation3], 0  ;;  %s19_s14 = sshll.u32 %s195_s2, 4  ;;  %s148_s15 = smov [#allocation2]   ;;  %s20_s14 = int_to_ptr.vmem [resolvable:$true] %s19_s14 }
   0x2   :  { %22 = dma.vmem_to_smem %s20_s14, 16, %s148_s15, [#allocation4]  }
   0x3   :  { %144 = dma.done.wait [#allocation4], 16  }
   0x4   :  { %145 = vsyncadd [#allocation4], 4294967280 }
   0x5   :  { %27 = sfence }
   0x6   :  { %v30_v0 = vld [vmem:[%s194_s1] sm:$0xff]  ;;  %v149_v1 = vmov 1   ;;  %v150_v2 = vmov 0   ;;  %v31_v3 = vld [vmem:[%s194_s1 + $0x8] sm:$0x3]  ;;  %vm44_vm0 = vcmask 64512  }
   0x7   :  { %106 = vset.pattern.permute.xlu1 %v149_v1  ;;  %105 = vset.pattern.permute.xlu0 %v150_v2  ;;  %v28_v6 = vld [vmem:[%s193_s0] sm:$0xff]  ;;  %v29_v7 = vld [vmem:[%s193_s0 + $0x8] sm:$0x3]  ;;  %vm46_vm1 = vcmask 58368   ;;  %s55_s1 = sld [smem:[#allocation2]]  ;;  %s151_s23 = smov [#allocation5]  }
   0x8   :  { %59 = vperm.xlu1 %106, %v30_v0   ;;  %34 = vperm.xlu0 %105, %v30_v0   ;;  %s100_s0 = sld [smem:[#allocation2 + $0x1]]  ;;  %s88_s24 = sshll.u32 %s151_s23, 4  ;;  %vm80_vm2 = vcmask 1040384   ;;  %s89_s24 = int_to_ptr.vmem [resolvable:$true] %s88_s24 }
   0x9   :  { %s90_s27 = sshll.u32 %s196_s3, 4  ;;  %s91_s27 = int_to_ptr.hbm [resolvable:$true] %s90_s27 }
   0xd   :  { %v56_v30 = vstv %s55_s1 }
   0xe   :  { %v78_v31 = vstv %s100_s0 }
  0x10   :  { %63 = vperm.xlu1 %106, %v31_v3   ;;  %39 = vperm.xlu0 %105, %v31_v3  }
  0x18   :  { %107 = vset.pattern.permute.xlu0 %v149_v1 }
  0x7a   :  { %v60_v4 = vpop.permute.xlu1 %59  ;;  %v35_v5 = vpop.permute.xlu0 %34 }
  0x7b   :  { %v66_v8 = vmul.f32 %v60_v4, %v28_v6  ;;  %v42_v9 = vmul.f32 %v35_v5, %v28_v6 }
  0x7d   :  { %v68_v14 = vsel %vm44_vm0, %v66_v8, 0.0  ;;  %v45_v15 = vsel %vm44_vm0, %v42_v9, 0.0 }
  0x82   :  { %v64_v10 = vpop.permute.xlu1 %63  ;;  %v40_v11 = vpop.permute.xlu0 %39 }
  0x83   :  { %v67_v12 = vmul.f32 %v64_v10, %v29_v7  ;;  %v43_v13 = vmul.f32 %v40_v11, %v29_v7 }
  0x85   :  { %v69_v16 = vsel %vm46_vm1, %v67_v12, 0.0  ;;  %v47_v17 = vsel %vm46_vm1, %v43_v13, 0.0 }
  0x86   :  { %v70_v18 = vadd.f32 %v69_v16, %v68_v14  ;;  %v48_v19 = vadd.f32 %v47_v17, %v45_v15 }
  0x88   :  { %v71_v20 = vrot.slane %v70_v18, 4  ;;  %v49_v21 = vrot.slane %v48_v19, 4 }
  0x8a   :  { %v72_v22 = vadd.f32 %v71_v20, %v70_v18  ;;  %v50_v23 = vadd.f32 %v49_v21, %v48_v19 }
  0x8c   :  { %v73_v24 = vrot.slane %v72_v22, 2  ;;  %v51_v25 = vrot.slane %v50_v23, 2 }
  0x8e   :  { %v74_v26 = vadd.f32 %v73_v24, %v72_v22  ;;  %v52_v27 = vadd.f32 %v51_v25, %v50_v23 }
  0x90   :  { %v75_v28 = vrot.slane %v74_v26, 1  ;;  %v53_v29 = vrot.slane %v52_v27, 1 }
  0x92   :  { %v54_v32 = vadd.f32 %v53_v29, %v52_v27  ;;  %v76_v33 = vadd.f32 %v75_v28, %v74_v26 }
  0x94   :  { %v57_v34 = vadd.f32 %v56_v30, %v54_v32  ;;  %v79_v35 = vadd.f32 %v78_v31, %v76_v33 }
  0x96   :  { %v81_v36 = vsel %vm80_vm2, %v57_v34, %v79_v35 }
  0x97   :  { %82 = vst.msk [vmem:[#allocation5] sm:$0x3] %vm46_vm1, %v81_v36 }
  0x98   :  { %93 = dma.vmem_to_hbm [thread:$0]  %s89_s24, 32, %s91_s27, [#allocation3]  }
  0x99   :  { %146 = dma.done.wait [#allocation3], 32  }
  0x9a   :  { %147 = vsyncadd [#allocation3], 4294967264 }
  0x9b   :  { %98 = vsyncpa [#allocation3], 1 }
  0x9c   :  { %99 = vsyncpa [#allocation4], 1 }

</bundles_post_ra>
